<compile_context>
chip_gen: v6e
topology: v6e:2x2x1
jax: 0.10.0
libtpu: 0.0.40
codegen_flags: <defaults>
</compile_context>

<pallas_src>
import functools
import math

import numpy as np
import jax
import jax.numpy as jnp
from jax import lax
from jax.experimental import pallas as pl
from jax.experimental.pallas import tpu as pltpu


# ----------------------------------------------------------------------------
# helpers
# ----------------------------------------------------------------------------
def _pick_block(T, candidates=(512, 256, 128)):
    """Largest candidate block that divides T, else the full length."""
    for c in candidates:
        if T % c == 0:
            return c
    return T


def _vmem_limit_bytes():
    """Explicit scoped-VMEM budget: ~3/4 of physical, capped at 100 MiB."""
    cap = 64 * 1024 * 1024
    try:
        cap = int(pltpu.get_tpu_info().vmem_capacity_bytes)
    except Exception:
        pass
    return int(min(cap * 3 // 4, 100 * 1024 * 1024))


# ----------------------------------------------------------------------------
# Kernel 1: ProbSparse measure  M[i] = max_{sampled j} QK[i,j] - sum_{sampled j} QK[i,j]/T
# Key-major layout: kq is (T_keys, tq_queries) so both reductions run along sublanes
# and the output is lane-dense.
# ----------------------------------------------------------------------------
def _measure_kernel(k_ref, q_ref, cnt_ref, m_ref, *, inv_len):
    k = k_ref[0]                                    # (T, E)   bf16
    q = q_ref[0]                                    # (tq, E)  bf16
    kq = lax.dot_general(k, q, (((1,), (1,)), ((), ())),
                         preferred_element_type=jnp.float32)        # (T, tq) f32 (MXU)
    cnt = cnt_ref[...]                              # (T, tq)  sample counts (bf16, exact)
    masked = jnp.where(cnt > 0, kq, jnp.float32(-1e30))
    m_max = jnp.max(masked, axis=0, keepdims=True)                  # (1, tq)
    m_sum = jnp.sum(cnt.astype(jnp.float32) * kq, axis=0, keepdims=True)
    m_ref[0] = m_max - m_sum * inv_len


def measure_call(q, k, cnt_t, *, vmem_limit):
    BH, T, E = q.shape
    tq = _pick_block(T, (256, 128))
    kernel = functools.partial(_measure_kernel, inv_len=1.0 / T)
    out = pl.pallas_call(
        kernel,
        out_shape=jax.ShapeDtypeStruct((BH, 1, T), jnp.float32),    # lane-dense M
        grid=(BH, T // tq),
        in_specs=[
            pl.BlockSpec((1, T, E), lambda b, qb: (b, 0, 0)),       # all keys of head b
            pl.BlockSpec((1, tq, E), lambda b, qb: (b, qb, 0)),     # query block
            pl.BlockSpec((T, tq), lambda b, qb: (0, qb)),           # sample-count block
        ],
        out_specs=pl.BlockSpec((1, 1, tq), lambda b, qb: (b, 0, qb)),
        compiler_params=pltpu.CompilerParams(
            dimension_semantics=("parallel", "parallel"),
            vmem_limit_bytes=vmem_limit),
    )(k, q, cnt_t)
    return out[:, 0, :]                                             # (BH, T)


# ----------------------------------------------------------------------------
# Kernel 2: flash-style attention over the selected (top) queries.
# Grid: (BH, key-blocks "arbitrary"); online softmax in VMEM scratch.
# ----------------------------------------------------------------------------
def _sparse_flash_kernel(qpos_ref, q_ref, k_ref, v_ref, o_ref,
                         m_sc, l_sc, acc_sc, *, scale, mask_flag):
    kb = pl.program_id(1)
    tk = k_ref.shape[1]

    @pl.when(kb == 0)
    def _():
        m_sc[...] = jnp.full(m_sc.shape, -1e30, m_sc.dtype)
        l_sc[...] = jnp.zeros(l_sc.shape, l_sc.dtype)
        acc_sc[...] = jnp.zeros(acc_sc.shape, acc_sc.dtype)

    q = q_ref[0]                                    # (u_pad, E)  bf16
    k = k_ref[0]                                    # (tk, E)     bf16
    s = lax.dot_general(q, k, (((1,), (1,)), ((), ())),
                        preferred_element_type=jnp.float32) * scale    # (u_pad, tk)

    if mask_flag:
        qpos = qpos_ref[0]                          # (u_pad, 1) int32 query positions
        col = kb * tk + lax.broadcasted_iota(jnp.int32, s.shape, 1)
        s = jnp.where(col > qpos, jnp.float32(-1e30), s)    # ProbMask (causal)

    m_prev = m_sc[...]
    m_new = jnp.maximum(m_prev, jnp.max(s, axis=-1, keepdims=True))
    alpha = jnp.exp(m_prev - m_new)
    p = jnp.exp(s - m_new)
    l_sc[...] = alpha * l_sc[...] + jnp.sum(p, axis=-1, keepdims=True)
    acc_sc[...] = alpha * acc_sc[...] + jnp.dot(
        p.astype(v_ref.dtype), v_ref[0], preferred_element_type=jnp.float32)
    m_sc[...] = m_new

    @pl.when(kb == pl.num_programs(1) - 1)
    def _():
        inv_l = pl.reciprocal(l_sc[...], approx=True)       # EUP divide
        o_ref[0] = (acc_sc[...] * inv_l).astype(o_ref.dtype)


def sparse_attn_call(qpos, q_reduce, k, v, *, scale, mask_flag, vmem_limit):
    BH, u_pad, E = q_reduce.shape
    T, Ev = k.shape[1], v.shape[2]
    tk = _pick_block(T)
    kernel = functools.partial(_sparse_flash_kernel, scale=scale, mask_flag=mask_flag)
    return pl.pallas_call(
        kernel,
        out_shape=jax.ShapeDtypeStruct((BH, u_pad, Ev), jnp.float32),
        grid=(BH, T // tk),
        in_specs=[
            pl.BlockSpec((1, u_pad, 1), lambda b, kb: (b, 0, 0)),   # query positions
            pl.BlockSpec((1, u_pad, E), lambda b, kb: (b, 0, 0)),   # selected queries
            pl.BlockSpec((1, tk, E), lambda b, kb: (b, kb, 0)),     # key block
            pl.BlockSpec((1, tk, Ev), lambda b, kb: (b, kb, 0)),    # value block
        ],
        out_specs=pl.BlockSpec((1, u_pad, Ev), lambda b, kb: (b, 0, 0)),
        scratch_shapes=[
            pltpu.VMEM((u_pad, 1), jnp.float32),    # running max
            pltpu.VMEM((u_pad, 1), jnp.float32),    # running denominator
            pltpu.VMEM((u_pad, Ev), jnp.float32),   # running numerator
        ],
        compiler_params=pltpu.CompilerParams(
            dimension_semantics=("parallel", "arbitrary"),
            vmem_limit_bytes=vmem_limit),
    )(qpos, q_reduce, k, v)


# ----------------------------------------------------------------------------
# Kernel 3a: initial context = cumsum(V) (causal case), streamed block-wise with a
# running carry (per-block tril matmul on the MXU, tril passed as a resident constant),
# then the selected rows are overwritten with ctx_top via dynamic row stores whose
# indices come from SMEM scalar prefetch.
# ----------------------------------------------------------------------------
def _ctx_cumsum_scatter_kernel(idx_ref, tril_ref, ctx_top_ref, v_ref, out_ref,
                               carry_ref):
    b = pl.program_id(0)
    t = pl.program_id(1)
    tb = v_ref.shape[1]
    u_pad = ctx_top_ref.shape[1]

    @pl.when(t == 0)
    def _():
        carry_ref[...] = jnp.zeros(carry_ref.shape, carry_ref.dtype)

    v = v_ref[0]                                            # (tb, Ev) bf16
    blk_cumsum = jnp.dot(tril_ref[...], v,
                         preferred_element_type=jnp.float32)   # (tb, Ev) f32 (MXU)
    out_ref[0] = (blk_cumsum + carry_ref[...]).astype(out_ref.dtype)
    # Last tril row is all-ones -> its cumsum row is exactly the block column-sum.
    carry_ref[...] = carry_ref[...] + blk_cumsum[tb - 1:tb, :]

    def scatter_one(j, carry):
        row = idx_ref[b * u_pad + j]                        # SMEM scalar (flat index)
        local = row - t * tb
        @pl.when(jnp.logical_and(local >= 0, local < tb))
        def _():
            out_ref[0, pl.ds(local, 1), :] = \
                ctx_top_ref[0, pl.ds(j, 1), :].astype(out_ref.dtype)
        return carry

    lax.fori_loop(0, u_pad, scatter_one, 0, unroll=True)


def context_cumsum_scatter_call(m_top, ctx_top, v, tril, *, out_dtype, vmem_limit):
    BH, u_pad, Ev = ctx_top.shape
    T = v.shape[1]
    tb = tril.shape[0]
    grid_spec = pltpu.PrefetchScalarGridSpec(
        num_scalar_prefetch=1,
        grid=(BH, T // tb),
        in_specs=[
            pl.BlockSpec((tb, tb), lambda b, t, idx: (0, 0)),       # constant tril
            pl.BlockSpec((1, u_pad, Ev), lambda b, t, idx: (b, 0, 0)),
            pl.BlockSpec((1, tb, Ev), lambda b, t, idx: (b, t, 0)),
        ],
        out_specs=pl.BlockSpec((1, tb, Ev), lambda b, t, idx: (b, t, 0)),
        scratch_shapes=[pltpu.VMEM((1, Ev), jnp.float32)],          # cumsum carry
    )
    return pl.pallas_call(
        _ctx_cumsum_scatter_kernel,
        out_shape=jax.ShapeDtypeStruct((BH, T, Ev), out_dtype),
        grid_spec=grid_spec,
        compiler_params=pltpu.CompilerParams(
            dimension_semantics=("parallel", "arbitrary"),
            vmem_limit_bytes=vmem_limit),
    )(m_top.reshape(-1), tril, ctx_top, v)


# ----------------------------------------------------------------------------
# Kernel 3b: non-causal case -> initial context = broadcast mean(V), then scatter.
# ----------------------------------------------------------------------------
def _ctx_mean_scatter_kernel(idx_ref, ctx_top_ref, vmean_ref, out_ref):
    b = pl.program_id(0)
    t = pl.program_id(1)
    tb = out_ref.shape[1]
    ev = out_ref.shape[2]
    u_pad = ctx_top_ref.shape[1]

    out_ref[0] = jnp.broadcast_to(vmean_ref[0], (tb, ev)).astype(out_ref.dtype)

    def scatter_one(j, carry):
        row = idx_ref[b * u_pad + j]
        local = row - t * tb
        @pl.when(jnp.logical_and(local >= 0, local < tb))
        def _():
            out_ref[0, pl.ds(local, 1), :] = \
                ctx_top_ref[0, pl.ds(j, 1), :].astype(out_ref.dtype)
        return carry

    lax.fori_loop(0, u_pad, scatter_one, 0, unroll=True)


def context_mean_scatter_call(m_top, ctx_top, v_mean, T, *, out_dtype, vmem_limit):
    BH, u_pad, Ev = ctx_top.shape
    tb = _pick_block(T)
    grid_spec = pltpu.PrefetchScalarGridSpec(
        num_scalar_prefetch=1,
        grid=(BH, T // tb),
        in_specs=[
            pl.BlockSpec((1, u_pad, Ev), lambda b, t, idx: (b, 0, 0)),
            pl.BlockSpec((1, 1, Ev), lambda b, t, idx: (b, 0, 0)),
        ],
        out_specs=pl.BlockSpec((1, tb, Ev), lambda b, t, idx: (b, t, 0)),
    )
    return pl.pallas_call(
        _ctx_mean_scatter_kernel,
        out_shape=jax.ShapeDtypeStruct((BH, T, Ev), out_dtype),
        grid_spec=grid_spec,
        compiler_params=pltpu.CompilerParams(
            dimension_semantics=("parallel", "parallel"),
            vmem_limit_bytes=vmem_limit),
    )(m_top.reshape(-1), ctx_top, v_mean)


# ----------------------------------------------------------------------------
# Forward wrapper (glue: layout transposes, sampling, top-k, gathers)
# ----------------------------------------------------------------------------
def prob_attention_forward(queries, keys, values, *, factor=5, scale=None,
                           mask_flag=True, sample_key=None,
                           compute_dtype=jnp.bfloat16):
    B, T, N, H, D = queries.shape
    vmem_limit = _vmem_limit_bytes()

    def to_bh_t_e(x):
        x = x.astype(compute_dtype)                # cast BEFORE transposes (halve HBM traffic)
        x = jnp.swapaxes(x, 3, 2)                  # B T H N d
        x = x.reshape(B, T, H, -1)                 # B T H (N*d)
        x = jnp.swapaxes(x, 2, 1)                  # B H T (N*d)
        return x.reshape(B * H, T, x.shape[-1])    # BH T E

    q = to_bh_t_e(queries)
    k = to_bh_t_e(keys)
    v = to_bh_t_e(values)
    BH, _, E = q.shape
    Ev = v.shape[-1]

    sample_k = min(factor * int(np.ceil(np.log(T))), T)
    n_top = min(factor * int(np.ceil(np.log(T))), T)

    # torch.randint equivalent: which keys each query row samples for the M measure.
    if sample_key is None:
        sample_key = jax.random.PRNGKey(0)
    index_sample = jax.random.randint(sample_key, (T, sample_k), 0, T)
    # Fold the sample into a (key, query) count matrix so the kernel never needs the
    # (BH, T, sample_k, E) gathered-key tensor; counts <= sample_k are exact in bf16.
    cnt = jnp.zeros((T, T), jnp.float32)
    cnt = cnt.at[jnp.arange(T)[:, None], index_sample].add(1.0)
    cnt_t = cnt.T.astype(compute_dtype)            # (T_keys, T_queries)

    M = measure_call(q, k, cnt_t, vmem_limit=vmem_limit)            # (BH, T)
    # TODO(synk): top-k query selection + gather stay in the JAX wrapper (no clean
    # in-kernel sort primitive); only O(BH*T) data, negligible next to the matmuls.
    _, m_top = lax.top_k(M, n_top)                                  # (BH, n_top)

    # Pad to a sublane multiple; duplicate indices are harmless under overwriting stores.
    u_pad = -(-n_top // 8) * 8
    if u_pad > n_top:
        pad = jnp.broadcast_to(m_top[:, :1], (BH, u_pad - n_top))
        m_top = jnp.concatenate([m_top, pad], axis=1)
    m_top = m_top.astype(jnp.int32)                                 # (BH, u_pad)

    q_reduce = jnp.take_along_axis(q, m_top[:, :, None], axis=1)    # (BH, u_pad, E)
    qpos = m_top[:, :, None]                                        # (BH, u_pad, 1)

    scale_v = float(scale) if scale is not None else 1.0 / math.sqrt(D)

    ctx_top = sparse_attn_call(qpos, q_reduce, k, v, scale=scale_v,
                               mask_flag=mask_flag, vmem_limit=vmem_limit)

    out_dtype = queries.dtype
    if mask_flag:
        tb = _pick_block(T)
        tril = jnp.tril(jnp.ones((tb, tb), compute_dtype))          # resident constant
        context = context_cumsum_scatter_call(m_top, ctx_top, v, tril,
                                              out_dtype=out_dtype,
                                              vmem_limit=vmem_limit)
    else:
        v_mean = jnp.mean(v.astype(jnp.float32), axis=1, keepdims=True)
        context = context_mean_scatter_call(m_top, ctx_top, v_mean, T,
                                            out_dtype=out_dtype,
                                            vmem_limit=vmem_limit)

    # reshape back exactly as the PyTorch forward does
    context = context.reshape(B, H, T, Ev)
    context = jnp.swapaxes(context, 2, 1)          # B T H Ev
    context = context.reshape(B, T, H, -1, D)      # B T H N D
    context = jnp.swapaxes(context, 3, 2)          # B T N H D
    return context.astype(queries.dtype), None     # output_attention=False -> None


# ----------------------------------------------------------------------------
# Pure-JAX reference: with sample_k == n_top == T every query is selected, so the
# output must equal full (optionally causal) attention.
# ----------------------------------------------------------------------------
def _reference_full(queries, keys, values, scale, causal):
    B, T, N, H, D = queries.shape

    def to_bhte(x):
        x = jnp.swapaxes(x, 3, 2).reshape(B, T, H, -1)
        return jnp.swapaxes(x, 2, 1)

    q, k, v = to_bhte(queries), to_bhte(keys), to_bhte(values)
    s = jnp.einsum("bhte,bhse->bhts", q, k) * scale
    if causal:
        mask = jnp.triu(jnp.ones((T, T), dtype=bool), 1)
        s = jnp.where(mask[None, None], -jnp.inf, s)
    a = jax.nn.softmax(s, axis=-1)
    ctx = jnp.einsum("bhts,bhse->bhte", a, v)
    ctx = jnp.swapaxes(ctx, 2, 1).reshape(B, T, H, -1, D)
    return jnp.swapaxes(ctx, 3, 2)


if __name__ == "__main__":
    key = jax.random.PRNGKey(0)
    kq, kk, kv, ksamp = jax.random.split(key, 4)

    B, T, N, H, D = 2, 8, 4, 2, 8        # small shapes; factor*ceil(log T) >= T
    queries = jax.random.normal(kq, (B, T, N, H, D), dtype=jnp.float32)
    keys = jax.random.normal(kk, (B, T, N, H, D), dtype=jnp.float32)
    values = jax.random.normal(kv, (B, T, N, H, D), dtype=jnp.float32)

    # The kernels feed the MXU in bf16, so compare against references computed from
    # the same bf16-quantized inputs (softmax itself stays in f32 in both).
    quant = lambda x: x.astype(jnp.bfloat16).astype(jnp.float32)

    # causal (mask_flag=True) path
    context, attn = prob_attention_forward(
        queries, keys, values, factor=5, scale=None, mask_flag=True,
        sample_key=ksamp)
    context = jax.block_until_ready(context)
    assert context.shape == (B, T, N, H, D)
    assert attn is None
    ref = _reference_full(quant(queries), quant(keys), quant(values),
                          1.0 / math.sqrt(D), causal=True)
    np.testing.assert_allclose(np.asarray(context), np.asarray(ref),
                               rtol=2e-2, atol=2e-2)

    # non-causal (mask_flag=False) path
    context_nc, attn_nc = prob_attention_forward(
        queries, keys, values, factor=5, scale=None, mask_flag=False,
        sample_key=ksamp)
    context_nc = jax.block_until_ready(context_nc)
    assert context_nc.shape == (B, T, N, H, D)
    assert attn_nc is None
    ref_nc = _reference_full(quant(queries), quant(keys), quant(values),
                             1.0 / math.sqrt(D), causal=False)
    np.testing.assert_allclose(np.asarray(context_nc), np.asarray(ref_nc),
                               rtol=2e-2, atol=2e-2)

    print("KERNEL_OK")
</pallas_src>

<mosaic_0001>
module attributes {stable_mosaic.version = 11 : i64} {
  func.func @_measure_kernel(%arg0: i32, %arg1: i32, %arg2: memref<1x8x32xbf16, #tpu.memory_space<vmem>>, %arg3: memref<1x8x32xbf16, #tpu.memory_space<vmem>>, %arg4: memref<8x8xbf16, #tpu.memory_space<vmem>>, %arg5: memref<1x1x8xf32, #tpu.memory_space<vmem>>) attributes {dimension_semantics = [#tpu.dimension_semantics<parallel>, #tpu.dimension_semantics<parallel>], iteration_bounds = array<i64: 4, 1>, scalar_prefetch = 0 : i64, scratch_operands = 0 : i64, tpu.core_type = #tpu.core_type<tc>, window_params = [{transform_indices = @transform_0, window_bounds = array<i64: 1, 8, 32>}, {transform_indices = @transform_1, window_bounds = array<i64: 1, 8, 32>}, {transform_indices = @transform_2, window_bounds = array<i64: 8, 8>}, {transform_indices = @transform_3, window_bounds = array<i64: 1, 1, 8>}]} {
    %c0 = arith.constant 0 : index
    %c0_0 = arith.constant 0 : index
    %c0_1 = arith.constant 0 : index
    %0 = vector.load %arg2[%c0, %c0_0, %c0_1] : memref<1x8x32xbf16, #tpu.memory_space<vmem>>, vector<1x8x32xbf16>
    %1 = vector.shape_cast %0 : vector<1x8x32xbf16> to vector<8x32xbf16>
    %c0_2 = arith.constant 0 : index
    %c0_3 = arith.constant 0 : index
    %c0_4 = arith.constant 0 : index
    %2 = vector.load %arg3[%c0_2, %c0_3, %c0_4] : memref<1x8x32xbf16, #tpu.memory_space<vmem>>, vector<1x8x32xbf16>
    %3 = vector.shape_cast %2 : vector<1x8x32xbf16> to vector<8x32xbf16>
    %cst = arith.constant dense<0.000000e+00> : vector<8x8xf32>
    %4 = tpu.matmul %1, %3, %cst {dimension_numbers = #tpu.dot_dimension_numbers<[1], [1], [0], [0], [0, 0, 1, 0], [], []>} : vector<8x32xbf16>, vector<8x32xbf16>, vector<8x8xf32> -> vector<8x8xf32>
    %c0_5 = arith.constant 0 : index
    %c0_6 = arith.constant 0 : index
    %5 = vector.load %arg4[%c0_5, %c0_6] : memref<8x8xbf16, #tpu.memory_space<vmem>>, vector<8x8xbf16>
    %cst_7 = arith.constant 0.000000e+00 : bf16
    %6 = vector.broadcast %cst_7 : bf16 to vector<8x8xbf16>
    %7 = arith.cmpf ogt, %5, %6 : vector<8x8xbf16>
    %cst_8 = arith.constant -1.000000e+30 : f32
    %8 = vector.broadcast %cst_8 : f32 to vector<8x8xf32>
    %9 = arith.select %7, %4, %8 : vector<8x8xi1>, vector<8x8xf32>
    %cst_9 = arith.constant dense<0xFF800000> : vector<8xf32>
    %10 = vector.multi_reduction <maximumf>, %9, %cst_9 [0] : vector<8x8xf32> to vector<8xf32>
    %11 = vector.shape_cast %10 : vector<8xf32> to vector<1x8xf32>
    %12 = arith.extf %5 : vector<8x8xbf16> to vector<8x8xf32>
    %13 = arith.mulf %12, %4 : vector<8x8xf32>
    %cst_10 = arith.constant dense<0.000000e+00> : vector<8xf32>
    %14 = vector.multi_reduction <add>, %13, %cst_10 [0] : vector<8x8xf32> to vector<8xf32>
    %15 = vector.shape_cast %14 : vector<8xf32> to vector<1x8xf32>
    %cst_11 = arith.constant 1.250000e-01 : f32
    %16 = vector.broadcast %cst_11 : f32 to vector<1x8xf32>
    %17 = arith.mulf %15, %16 : vector<1x8xf32>
    %18 = arith.subf %11, %17 : vector<1x8xf32>
    %c0_12 = arith.constant 0 : index
    %c0_13 = arith.constant 0 : index
    %c0_14 = arith.constant 0 : index
    %19 = vector.load %arg5[%c0_12, %c0_13, %c0_14] : memref<1x1x8xf32, #tpu.memory_space<vmem>>, vector<1x1x8xf32>
    %20 = vector.shape_cast %19 : vector<1x1x8xf32> to vector<1x8xf32>
    %21 = vector.shape_cast %18 : vector<1x8xf32> to vector<1x1x8xf32>
    tpu.vector_store %arg5[%c0_12, %c0_13, %c0_14], %21 {strides = array<i32>} : memref<1x1x8xf32, #tpu.memory_space<vmem>>, vector<1x1x8xf32>,
    return
  }
  func.func @transform_0(%arg0: i32, %arg1: i32) -> (i32, i32, i32) {
    %c0_i32 = arith.constant 0 : i32
    %c0_i32_0 = arith.constant 0 : i32
    %c0_i32_1 = arith.constant 0 : i32
    return %arg0, %c0_i32, %c0_i32_0 : i32, i32, i32
  }
  func.func @transform_1(%arg0: i32, %arg1: i32) -> (i32, i32, i32) {
    %c0_i32 = arith.constant 0 : i32
    %c0_i32_0 = arith.constant 0 : i32
    return %arg0, %arg1, %c0_i32 : i32, i32, i32
  }
  func.func @transform_2(%arg0: i32, %arg1: i32) -> (i32, i32) {
    %c0_i32 = arith.constant 0 : i32
    %c0_i32_0 = arith.constant 0 : i32
    return %c0_i32, %arg1 : i32, i32
  }
  func.func @transform_3(%arg0: i32, %arg1: i32) -> (i32, i32, i32) {
    %c0_i32 = arith.constant 0 : i32
    %c0_i32_0 = arith.constant 0 : i32
    return %arg0, %c0_i32, %arg1 : i32, i32, i32
  }
}

</mosaic_0001>

<bundles_post_ra>
// kernel: tpu_custom_call.1
= control target key start
LH: loop header
LB: loop body
LE: loop exit
PB: predicated region body
PF: predicated region fallthrough
CT: control target
= control target key end

     0   :  { %s942_s0 = inlined_call_operand.hbm [shape: bf16[4,8,32], index: 0, kind: input, shape index: {}]   ;;  %s943_s1 = inlined_call_operand.hbm [shape: bf16[4,8,32], index: 1, kind: input, shape index: {}]   ;;  %s944_s2 = inlined_call_operand.hbm [shape: bf16[8,8], index: 2, kind: input, shape index: {}]   ;;  %s945_s3 = inlined_call_operand.hbm [shape: f32[4,1,8], index: 3, kind: output, shape index: {}]  }
   0x1   :  { %946 = sst [smem:[#allocation13_spill]] %s942_s0 }
   0x2   :  { %8 = vsyncpa [#allocation3], 0 }
   0x3   :  { %10 = vsyncpa [#allocation3 + $0x1], 0 }
   0x4   :  { %11 = vsyncpa [#allocation6], 0 }
   0x5   :  { %13 = vsyncpa [#allocation6 + $0x1], 0 }
   0x6   :  { %14 = vsyncpa [#allocation4], 0 }
   0x7   :  { %16 = vsyncpa [#allocation4 + $0x1], 0  ;;  %s766_s12 = smov 0   ;;  %s768_s13 = smov 0  }
   0x8   :  { %s770_s14 = smov 0   ;;  %s772_s15 = smov 0  }
   0x9   :  { %s774_s16 = smov 0   ;;  %s776_s17 = smov 0  }
   0xa LB: > { %s797_s18 = sadd.s32 4294967295, %s737_s17   ;;  %s462_s19 = sadd.s32 4294967294, %s737_s17   ;;  %s737_s17 = sphi %s776_s17, %s22_s17   ;;  %s733_s16 = sphi %s774_s16, %s960_s16   ;;  %s729_s15 = sphi %s772_s15, %s959_s15   ;;  %s725_s14 = sphi %s770_s14, %s958_s14   ;;  %s721_s13 = sphi %s768_s13, %s957_s13   ;;  %s717_s12 = sphi %s766_s12, %s956_s12  }
   0xb   : > { %p54_p0 = scmp.ne.s32.totalorder %s721_s13, %s717_s12  ;;  %p55_p1 = scmp.eq.s32.totalorder %s797_s18, 0 }
   0xc   : > { %p140_p3 = scmp.eq.s32.totalorder %s462_s19, 3  ;;  %p463_p5 = scmp.ge.s32.totalorder %s737_s17, 1 }
   0xd   : > { %p806_p4 = por %p55_p1, %p54_p0  ;;  %p147_p7 = scmp.lt.s32.totalorder %s737_s17, 5 }
   0xe   : > { %p811_p6 = por %p140_p3, %p54_p0  ;;  %s739_s23 = smov [#allocation7]  }
   0xf   : > { %p816_p8 = pnand %p463_p5, %p147_p7  ;;  %s162_s24 = sshll.u32 %s739_s23, 4  ;;  %s163_s24 = int_to_ptr.vmem [resolvable:$true] %s162_s24 }
  0x10   : > { %s948_s21 = scalar_select %p811_p6, 1, 0 }
  0x11   : > { %p496_p9 = pneg %p816_p8  ;;  %s34_s26 = sadd.s32 1, %s733_s16 }
  0x12   : > { %s41_s27 = sadd.s32 1, %s725_s14  ;;  %p36_p11 = scmp.ge.s32.totalorder %s34_s26, 4 }
  0x13   : > { %p824_p10 = pnand %p496_p9, %p55_p1  ;;  %s578_s28 = scalar_lea.vmem %s163_s24, 64 }
  0x14   : > { %p579_p13 = scmp.ne.s32.totalorder %s163_s24, %s578_s28  ;;  %p586_p5 = scmp.lt.s32.totalorder %s163_s24, %s163_s24 }
  0x15   : > { %p569_p12 = pneg %p824_p10  ;;  %p587_p7 = scmp.lt.s32.totalorder %s578_s28, %s578_s28 }
  0x17   : > { %p581_p0 = pnand %p579_p13, %p569_p12  ;;  %p588_p2 = por %p587_p7, %p586_p5 }
  0x19   : > { %p582_p3 = pneg %p581_p0 }
  0x1b   : > { %p589_p6 = pnand %p588_p2, %p582_p3 }
  0x1d   : > { %592 = shalt.err (!%p589_p6)
}
  0x1e   : > { %499 = dma.hbm_to_vmem [thread:$0]  (!%p824_p10), %s944_s2, 64, %s163_s24, [#allocation6]  }
  0x1f   : > { %s962_s26 = smov (%p36_p11, %s34_s26), 0  ;;  %p48_p2 = scmp.ne.s32.totalorder %s725_s14, %s721_s13 }
  0x20   : > { %p49_p6 = scmp.eq.s32.totalorder %s737_s17, 0  ;;  %s38_s4 = ssub.s32 %s733_s16, %s962_s26 }
  0x21   : > { %p512_p9 = scmp.lt.s32.totalorder %s737_s17, 4  ;;  %p39_p12 = scmp.eq.s32.totalorder %s38_s4, 0 }
  0x22   : > { %p50_p13 = por %p49_p6, %p48_p2  ;;  %p951_p0 = scmp.eq.s32.totalorder %s797_s18, 3 }
  0x23   : > { %s173_s6 = sand.u32 1, %s725_s14   ;;  %s467_s9 = sshll.u32 %s733_s16, 6 }
  0x24   : > { %p847_p3 = por %p951_p0, %p48_p2  ;;  %s466_s8 = sshll.u32 %s173_s6, 2 }
  0x25   : > { %s853_s7 = scalar_select %p39_p12, %s725_s14, %s41_s27  }
  0x26   : > { %s953_s0 = sld [smem:[#allocation13_spill]]  ;;  %s177_s23 = scalar_lea.vmem [#allocation2], %s466_s8 }
  0x27   : > { %s184_s24 = sshll.u32 %s177_s23, 4  ;;  %p859_p10 = pnand %p512_p9, %p50_p13  ;;  %s185_s24 = int_to_ptr.vmem [resolvable:$true] %s184_s24 }
  0x28   : > { %s866_s27 = scalar_lea.hbm %s943_s1, %s467_s9  ;;  %s191_s30 = sand.u32 1, %s737_s17  }
  0x29   : > { %s174_s4 = scalar_lea.sflag [#allocation3], %s173_s6  ;;  %p595_p11 = pneg %p859_p10 }
  0x2a   : > { %s606_s10 = scalar_lea.vmem %s185_s24, 64  ;;  %s740_s11 = smov [#allocation2]  }
  0x2b   : > { %p607_p5 = scmp.ne.s32.totalorder %s185_s24, %s606_s10  ;;  %s611_s23 = sshll.u32 %s740_s11, 4  ;;  %s612_s23 = int_to_ptr.vmem [resolvable:$false] %s611_s23 }
  0x2c   : > { %s182_s19 = scalar_lea.hbm %s953_s0, %s467_s9  ;;  %s613_s0 = scalar_lea.vmem %s612_s23, 128 }
  0x2d   : > { %p609_p7 = pnand %p607_p5, %p595_p11  ;;  %p614_p6 = scmp.lt.s32.totalorder %s185_s24, %s612_s23 }
  0x2e   : > { %p615_p9 = scmp.lt.s32.totalorder %s613_s0, %s606_s10 }
  0x2f   : > { %p610_p2 = pneg %p609_p7 }
  0x30   : > { %p616_p12 = por %p615_p9, %p614_p6 }
  0x32   : > { %p617_p13 = pnand %p616_p12, %p610_p2 }
  0x34   : > { %620 = shalt.err (!%p617_p13)
}
  0x35   : > { %503 = dma.hbm_to_vmem [thread:$0]  (!%p859_p10), %s182_s19, 64, %s185_s24, %s174_s4  }
  0x36   : > { %s195_s6 = scalar_lea.vmem [#allocation5], %s466_s8  ;;  %s192_s28 = scalar_lea.sflag [#allocation6], %s191_s30 }
  0x37   : > { %s203_s9 = sshll.u32 %s195_s6, 4  ;;  %s741_s11 = smov [#allocation5]   ;;  %s204_s9 = int_to_ptr.vmem [resolvable:$true] %s203_s9 }
  0x38   : > { %s634_s29 = scalar_lea.vmem %s204_s9, 64  ;;  %s639_s23 = sshll.u32 %s741_s11, 4  ;;  %s640_s23 = int_to_ptr.vmem [resolvable:$false] %s639_s23 }
  0x39   : > { %p635_p0 = scmp.ne.s32.totalorder %s204_s9, %s634_s29  ;;  %s641_s0 = scalar_lea.vmem %s640_s23, 128 }
  0x3a   : > { %p642_p2 = scmp.lt.s32.totalorder %s204_s9, %s640_s23  ;;  %p643_p6 = scmp.lt.s32.totalorder %s641_s0, %s634_s29 }
  0x3b   : > { %p637_p5 = pnand %p635_p0, %p595_p11 }
  0x3c   : > { %p644_p9 = por %p643_p6, %p642_p2 }
  0x3d   : > { %p638_p7 = pneg %p637_p5 }
  0x3f   : > { %p645_p12 = pnand %p644_p9, %p638_p7 }
  0x41   : > { %648 = shalt.err (!%p645_p12)
}
  0x42   : > { %506 = dma.hbm_to_vmem [thread:$0]  (!%p859_p10), %s866_s27, 64, %s204_s9, %s192_s28  }
  0x43   : > { %212 = sbr.rel (%p816_p8) target bundleno = 313 (0x139), region = 32  ;;  %s885_s8 = sand.u32 (!%p816_p8), 1, %s721_s13  }
  0x44   : > { %s471_s19 = sshll.u32 (!%p816_p8), %s885_s8, 2  ;;  %s215_s24 = scalar_lea.sflag (!%p816_p8), [#allocation3], %s885_s8 }
  0x45   : > { %s218_s30 = scalar_lea.vmem (!%p816_p8), [#allocation2], %s471_s19 }
  0x48   : > { %700 = dma.done.wait (%p806_p4), %s215_s24, 64  }
  0x49   : > { %702 = vsyncadd (%p806_p4), %s215_s24, 4294967232  ;;  %s223_s25 = sand.u32 1, %s797_s18   ;;  %s227_s22 = scalar_lea.vmem [#allocation5], %s471_s19 }
  0x4a   : > { %s224_s27 = scalar_lea.sflag [#allocation6], %s223_s25 }
  0x4b   : > { %704 = dma.done.wait (%p806_p4), %s224_s27, 64  }
  0x4c   : > { %706 = vsyncadd (%p806_p4), %s224_s27, 4294967232 }
  0x4d   : > { %708 = dma.done.wait (%p55_p1), [#allocation6], 64  }
  0x4e   : > { %710 = vsyncadd (%p55_p1), [#allocation6], 4294967232  ;;  %v742_v0 = vmov 0.0   ;;  %vm743_vm0 = vmmov 0   ;;  %vm263_vm1 = vcmask 261120   ;;  %v744_v5 = vmov 0  }
  0x4f   : > { %480 = vmatprep.subr.bf16.mxu0 %v742_v0  ;;  %482 = vmatprep.mubr.msk.bf16.mxu0 %vm743_vm0, %v742_v0  ;;  %v262_v1 = vld [vmem:[%s227_s22] sm:$0xf]  ;;  %v261_v3 = vld [vmem:[%s218_s30] sm:$0xf]  ;;  %v310_v4 = vld [vmem:[#allocation7] sm:$0xf] }
  0x50   : > { %v268_v2 = vsel %vm263_vm1, %v262_v1, 0  ;;  %vm311_vm2 = vcmp.gt.bf16.partialorder %v310_v4, 0  ;;  %v324_v8 = vunpack.c.l.bf16 %v310_v4  ;;  %vm316_vm4 = vcmask 64512   ;;  %s475_s18 = sshll.u32 %s729_s15, 4  ;;  %s257_s20 = scalar_lea.vmem [#allocation8], %s885_s8 }
  0x51   : > { %481 = vmatpush3.bf16.xpose.msra.mxu0 %v268_v2  ;;  %v312_v6 = vsel %vm311_vm2, 65537, %v744_v5  ;;  %s351_s4 = sshll.u32 %s257_s20, 4  ;;  %vm335_vm5 = vcmask 57344   ;;  %s349_s9 = scalar_lea.hbm %s945_s3, %s475_s18  ;;  %s352_s4 = int_to_ptr.vmem [resolvable:$true] %s351_s4 }
  0x52   : > { %v313_v7 = vunpack.c.l.b16 %v312_v6  ;;  %s338_s28 = scalar_lea.sflag [#allocation4], %s885_s8  ;;  %s649_s29 = scalar_lea.vmem %s352_s4, 16 }
  0x53   : > { %p650_p1 = scmp.ne.s32.totalorder %s352_s4, %s649_s29  ;;  %s745_s11 = smov [#allocation8]  }
  0x54   : > { %vm314_vm3 = vcmp.ne.s32.totalorder %v313_v7, 0  ;;  %s653_s15 = sshll.u32 %s745_s11, 4  ;;  %s654_s15 = int_to_ptr.vmem [resolvable:$false] %s653_s15 }
  0x55   : > { %p651_p4 = pnand %p650_p1, %p847_p3  ;;  %s655_s23 = scalar_lea.vmem %s654_s15, 32 }
  0x56   : > { %p656_p10 = scmp.lt.s32.totalorder %s352_s4, %s654_s15  ;;  %p657_p11 = scmp.lt.s32.totalorder %s655_s23, %s649_s29 }
  0x57   : > { %p652_p8 = pneg %p651_p4 }
  0x58   : > { %483 = vmatmul.mubr.msk.bf16.vlgmr.msra.gmra.mxu0 %vm263_vm1, %v261_v3  ;;  %p658_p13 = por %p657_p11, %p656_p10 }
  0x5a   : > { %p659_p0 = pnand %p658_p13, %p652_p8 }
 0x118   : > { %v304_v9 = vpop.f32.mrf.mxu0 }
 0x119   : > { %v315_v10 = vsel %vm314_vm3, %v304_v9, -1e+30  ;;  %v325_v11 = vmul.f32 %v324_v8, %v304_v9 }
 0x11a   : > { %v317_v12 = vsel %vm316_vm4, %v315_v10, -inf  ;;  %v484_v13 = vpop.f32.mrf.mxu0 }
 0x11b   : > { %v318_v14 = vrot.slane %v317_v12, 4  ;;  %v326_v15 = vsel %vm316_vm4, %v325_v11, 0.0 }
 0x11c   : > { %v327_v16 = vrot.slane %v326_v15, 4  ;;  %v307_v17 = vpop.f32.mrf.mxu0 }
 0x11d   : > { %v319_v18 = vmax.f32 %v317_v12, %v318_v14 }
 0x11e   : > { %v328_v19 = vadd.f32 %v327_v16, %v326_v15  ;;  %v485_v20 = vpop.f32.mrf.mxu0 }
 0x11f   : > { %v320_v21 = vrot.slane %v319_v18, 2 }
 0x120   : > { %v329_v22 = vrot.slane %v328_v19, 2 }
 0x121   : > { %v321_v23 = vmax.f32 %v319_v18, %v320_v21 }
 0x122   : > { %v330_v24 = vadd.f32 %v329_v22, %v328_v19 }
 0x123   : > { %v322_v25 = vrot.slane %v321_v23, 1 }
 0x124   : > { %v331_v26 = vrot.slane %v330_v24, 1 }
 0x125   : > { %v323_v28 = vmax.f32 %v321_v23, %v322_v25 }
 0x126   : > { %v332_v27 = vadd.f32 %v331_v26, %v330_v24 }
 0x128   : > { %v333_v29 = vmul.f32 0.125, %v332_v27 }
 0x12a   : > { %v334_v30 = vsub.f32 %v323_v28, %v333_v29 }
 0x12c   : > { %336 = vst.msk [vmem:[%s257_s20] sm:$0x1] %vm335_vm5, %v334_v30 }
 0x12d   : > { %662 = shalt.err (!%p659_p0)
}
 0x12e   : > { %s663_s0 = scalar_lea.hbm %s349_s9, 16  ;;  %s667_s24 = scalar_lea.hbm %s945_s3, 64 }
 0x12f   : > { %p664_p5 = scmp.ne.s32.totalorder %s349_s9, %s663_s0  ;;  %p668_p6 = scmp.lt.s32.totalorder %s349_s9, %s945_s3 }
 0x130   : > { %p669_p9 = scmp.lt.s32.totalorder %s667_s24, %s663_s0 }
 0x131   : > { %p665_p7 = pnand %p664_p5, %p847_p3 }
 0x132   : > { %p670_p12 = por %p669_p9, %p668_p6 }
 0x133   : > { %p666_p2 = pneg %p665_p7 }
 0x135   : > { %p671_p1 = pnand %p670_p12, %p666_p2 }
 0x137   : > { %674 = shalt.err (!%p671_p1)
}
 0x138   : > { %494 = dma.vmem_to_hbm [thread:$0]  (%p847_p3), %s352_s4, 16, %s349_s9, %s338_s28  }
 0x139 PF: > { %p514_p4 = scmp.ge.s32.totalorder %s737_s17, 2  ;;  %s363_s27 = sand.u32 1, %s717_s12  }
 0x13a   : > { %p955_p8 = scmp.ne.s32.totalorder %s948_s21, 0  ;;  %s364_s22 = scalar_lea.sflag [#allocation4], %s363_s27 }
 0x13c   : > { %p508_p10 = pnand %p514_p4, %p955_p8 }
 0x13e   : > { %p509_p11 = pneg %p508_p10 }
 0x140   : > { %712 = dma.done.wait (%p509_p11), %s364_s22, 16  }
 0x141   : > { %714 = vsyncadd (%p509_p11), %s364_s22, 4294967280  ;;  %s22_s17 = sadd.s32 1, %s737_s17   ;;  %s956_s12 = smov %s721_s13 }
 0x142   : > { %p19_p13 = scmp.ge.s32.totalorder %s22_s17, 6   ;;  %s957_s13 = smov %s725_s14 }
 0x143   : > { %s958_s14 = smov %s853_s7  ;;  %s959_s15 = smov %s733_s16 }
 0x144   : > { %s960_s16 = smov %s962_s26  ;;  %21 = sbr.rel (!%p19_p13) target bundleno = 10 (0xa), region = 95 }
 0x149   :  { %368 = vsyncpa [#allocation3], 1 }
 0x14a   :  { %370 = vsyncpa [#allocation3 + $0x1], 1 }
 0x14b   :  { %371 = vsyncpa [#allocation6], 1 }
 0x14c   :  { %373 = vsyncpa [#allocation6 + $0x1], 1 }
 0x14d   :  { %374 = vsyncpa [#allocation4], 1 }
 0x14e   :  { %376 = vsyncpa [#allocation4 + $0x1], 1 }

</bundles_post_ra>
